<compile_context>
chip_gen: v5e
topology: v5e:2x2
jax: 0.10.0
libtpu: 0.0.40
codegen_flags: <defaults>
</compile_context>

<pallas_src>
import math

import jax
import jax.numpy as jnp
from jax.experimental import pallas as pl
from jax.experimental.pallas import tpu as pltpu

NUM_LATENT = 50            # 1 global-feature token + 7*7 spatial tokens
LATENT_DIM = 512
SPATIAL_TOKENS = NUM_LATENT - 1   # 49


def positionalencoding1d(d_model, length):
    """JAX port of the reference sin/cos positional encoding."""
    if d_model % 2 != 0:
        raise ValueError(
            "Cannot use sin/cos positional encoding with odd dim (got dim={:d})".format(d_model)
        )
    position = jnp.arange(0, length, dtype=jnp.float32)[:, None]                 # (L, 1)
    div_term = jnp.exp(
        jnp.arange(0, d_model, 2, dtype=jnp.float32) * -(math.log(10000.0) / d_model)
    )                                                                             # (D/2,)
    pe = jnp.zeros((length, d_model), jnp.float32)
    pe = pe.at[:, 0::2].set(jnp.sin(position * div_term))
    pe = pe.at[:, 1::2].set(jnp.cos(position * div_term))
    return pe


def _image_embedder_kernel(feature_ref, tokens_ref, pos0_ref, poss_ref,
                           scaler_ref, id_ref, cross_ref):
    """Per-(D-half, batch-tile) fused forward.

    feature_ref : (TB, DB)      VMEM  -- backbone global feature (token 0)
    tokens_ref  : (TB, HW, DB)  VMEM  -- backbone spatial tokens (tokens 1..L-1)
    pos0_ref    : (1, DB)       VMEM  -- pos emb of token 0
    poss_ref    : (HW, DB)      VMEM  -- pos emb of spatial tokens
    scaler_ref  : (1,)          SMEM  -- scalar multiplier for the id token
    id_ref      : (TB, DB)      VMEM out
    cross_ref   : (TB, HW, DB)  VMEM out

    Compute stays in f32; stores cast to the output dtype (f32 or bf16).
    """
    s = scaler_ref[0]
    # id = (feature + pos[0]) * scaler          (tile-aligned add, no in-kernel slicing)
    id_ref[...] = ((feature_ref[...] + pos0_ref[...]) * s).astype(id_ref.dtype)
    # cross_att = spatial tokens + pos[1:]      (tile-aligned add, lane-dense store)
    cross_ref[...] = (tokens_ref[...] + poss_ref[...][None, :, :]).astype(cross_ref.dtype)


def _pick_batch_tile(B):
    """Batch rows per grid step.

    VMEM per step (f32, D split into two 256 halves, L=49 sublane-padded to 56,
    double-buffered in + out):
        tokens + cross : 2 * 2 * TB * 56 * 256 * 4 B  ~= TB * 229 KiB
        feature + id   : ~TB * 4 KiB;  pos blocks ~0.2 MiB
    TB = 64 -> ~14.5 MiB, comfortably under the 32 MiB vmem_limit_bytes we set
    (and under v7x's 64 MiB physical VMEM), while each step moves ~6 MiB of HBM
    traffic so the ~0.35 us per-grid-step overhead is <10% even at v7x's 3.2 TB/s.
    """
    if B <= 64:
        # Single batch block; block dim == full array dim satisfies the (8,128) rule.
        return B
    for tb in (64, 32, 16, 8):
        if B % tb == 0:
            return tb
    # TODO(synk): a masked tail block would avoid the padded rows' HBM traffic.
    return 32  # wrapper pads the batch up to a multiple of 32


def image_embedder_forward(feature, tokens, pos_emb, scaler, out_dtype=jnp.float32):
    """feature: (B, 512) f32; tokens: (B, HW, 512) f32 token-major; pos_emb: (1+HW, 512)."""
    B, L, D = tokens.shape
    assert D % 256 == 0, "D must split into two lane-aligned (128-multiple) halves"

    # Pre-split the positional embedding in the wrapper (done once by XLA) so the
    # kernel's adds are tile-aligned.
    pos0 = pos_emb[:1, :]          # (1, D)
    pos_spatial = pos_emb[1:, :]   # (L, D)

    TB = _pick_batch_tile(B)
    Bp = ((B + TB - 1) // TB) * TB
    if Bp != B:
        pad = Bp - B
        feature = jnp.pad(feature, ((0, pad), (0, 0)))
        tokens = jnp.pad(tokens, ((0, pad), (0, 0), (0, 0)))

    ND = 2                 # split D=512 into two 256-lane halves -> grid length always even
    DB = D // ND
    grid = (ND, Bp // TB)  # d is the slow axis so each pos half is DMA'd only once

    id_out, cross_out = pl.pallas_call(
        _image_embedder_kernel,
        out_shape=(
            jax.ShapeDtypeStruct((Bp, D), out_dtype),
            jax.ShapeDtypeStruct((Bp, L, D), out_dtype),
        ),
        grid=grid,
        in_specs=[
            pl.BlockSpec((TB, DB), lambda d, b: (b, d)),            # feature
            pl.BlockSpec((TB, L, DB), lambda d, b: (b, 0, d)),      # spatial tokens
            pl.BlockSpec((1, DB), lambda d, b: (0, d)),             # pos0
            pl.BlockSpec((L, DB), lambda d, b: (0, d)),             # pos_spatial
            pl.BlockSpec(memory_space=pltpu.MemorySpace.SMEM),      # scaler (scalar)
        ],
        out_specs=(
            pl.BlockSpec((TB, DB), lambda d, b: (b, d)),            # id
            pl.BlockSpec((TB, L, DB), lambda d, b: (b, 0, d)),      # cross_att
        ),
        compiler_params=pltpu.CompilerParams(
            # Every (d, b) step is independent -> shard across both v7x TensorCores;
            # grid product 2*nb is always even so both cores get balanced work.
            dimension_semantics=("parallel", "parallel"),
            # Safe on all generations (v5e/v6e 128 MiB, v7x 64 MiB physical) and lifts
            # v5e's 16 MiB scoped default so TB=64 tiles fit.
            vmem_limit_bytes=32 * 1024 * 1024,
        ),
    )(feature, tokens, pos0, pos_spatial, scaler)

    if Bp != B:
        id_out = id_out[:B]
        cross_out = cross_out[:B]
    return id_out, cross_out


def stub_backbone(x, w_proj):
    # TODO(synk): the real backbone is a user-supplied nn.Module; this deterministic
    # stub only reproduces its output contract (global feature (B,512) + one 7x7
    # spatial map), but emits the spatial map token-major (B, HW, 512) directly in
    # its epilogue so no standalone HBM transpose is needed before the kernel.
    # TODO(synk): fusing the pos-add/scale epilogue into this producer (or taking x
    # directly into the kernel) would remove the tokens HBM round-trip entirely.
    B, C, H, W = x.shape
    y = jnp.einsum("bchw,dc->bhwd", x, w_proj)                              # 1x1 conv, no bias
    y = y.reshape(B, H // 2, 2, W // 2, 2, LATENT_DIM).mean(axis=(2, 4))    # 2x2 avg pool -> 7x7
    tokens = y.reshape(B, -1, LATENT_DIM)                                   # (B, 49, 512), token = h*W + w
    feature = tokens.mean(axis=1)                                           # global avg pool
    return feature, [tokens]


def image_embedder(x, w_proj, pos_emb, scaler, out_dtype=jnp.float32):
    """End-to-end forward matching ImageEmbedder.forward(x) -> (id, cross_att)."""
    feature, spatial = stub_backbone(x, w_proj)
    tokens = spatial[0]            # (B, 49, 512) token-major
    return image_embedder_forward(feature, tokens, pos_emb, scaler, out_dtype=out_dtype)


if __name__ == "__main__":
    key = jax.random.PRNGKey(0)
    kx, kw = jax.random.split(key)

    B, C, H, W = 2, 4, 14, 14            # 14x14 -> 7x7 spatial map => 49 + 1 = 50 tokens
    x = jax.random.normal(kx, (B, C, H, W), dtype=jnp.float32)
    w_proj = jax.random.normal(kw, (LATENT_DIM, C), dtype=jnp.float32) * 0.1

    # Parameters, deterministically initialized as in the module's __init__:
    pos_emb = positionalencoding1d(LATENT_DIM, NUM_LATENT) - 0.5             # (50, 512)
    scaler = jnp.ones((1,), jnp.float32) * 0.001

    id_out, cross_out = image_embedder(x, w_proj, pos_emb, scaler)
    jax.block_until_ready((id_out, cross_out))

    # --- Pure-JAX reference of the exact PyTorch ImageEmbedder recipe, fed with the
    # NCHW (B, 512, 7, 7) spatial map the original backbone contract produces. ---
    y_nchw = jnp.einsum("bchw,dc->bdhw", x, w_proj)
    y_nchw = y_nchw.reshape(B, LATENT_DIM, H // 2, 2, W // 2, 2).mean(axis=(3, 5))
    feat_ref = y_nchw.mean(axis=(2, 3))
    sp_t = jnp.transpose(y_nchw.reshape(B, LATENT_DIM, -1), (0, 2, 1))        # (B, 49, 512)
    out_ref = jnp.concatenate([feat_ref[:, None, :], sp_t], axis=1) + pos_emb[None, :, :]
    id_ref = out_ref[:, 0, :] * scaler[0]
    cross_ref = out_ref[:, 1:, :]

    assert id_out.shape == (B, LATENT_DIM)
    assert cross_out.shape == (B, SPATIAL_TOKENS, LATENT_DIM)
    assert jnp.allclose(id_out, id_ref, atol=1e-5)
    assert jnp.allclose(cross_out, cross_ref, atol=1e-5)

    # Optional bf16-output path (compute in f32, cast on store) -> ~halves HBM bytes
    # of the dominant cross_att write; verify it runs and is close to the reference.
    id_bf, cross_bf = image_embedder(x, w_proj, pos_emb, scaler, out_dtype=jnp.bfloat16)
    jax.block_until_ready((id_bf, cross_bf))
    assert id_bf.dtype == jnp.bfloat16 and cross_bf.dtype == jnp.bfloat16
    assert jnp.allclose(id_bf.astype(jnp.float32), id_ref, atol=3e-2, rtol=3e-2)
    assert jnp.allclose(cross_bf.astype(jnp.float32), cross_ref, atol=3e-2, rtol=3e-2)

    print("KERNEL_OK")
</pallas_src>

<mosaic_0001>
module attributes {stable_mosaic.version = 11 : i64} {
  func.func @_image_embedder_kernel(%arg0: i32, %arg1: i32, %arg2: memref<2x256xf32, #tpu.memory_space<vmem>>, %arg3: memref<2x49x256xf32, #tpu.memory_space<vmem>>, %arg4: memref<1x256xf32, #tpu.memory_space<vmem>>, %arg5: memref<49x256xf32, #tpu.memory_space<vmem>>, %arg6: memref<1xf32, #tpu.memory_space<smem>>, %arg7: memref<2x256xf32, #tpu.memory_space<vmem>>, %arg8: memref<2x49x256xf32, #tpu.memory_space<vmem>>) attributes {dimension_semantics = [#tpu.dimension_semantics<parallel>, #tpu.dimension_semantics<parallel>], iteration_bounds = array<i64: 2, 1>, scalar_prefetch = 0 : i64, scratch_operands = 0 : i64, tpu.core_type = #tpu.core_type<tc>, window_params = [{transform_indices = @transform_0, window_bounds = array<i64: 2, 256>}, {transform_indices = @transform_1, window_bounds = array<i64: 2, 49, 256>}, {transform_indices = @transform_2, window_bounds = array<i64: 1, 256>}, {transform_indices = @transform_3, window_bounds = array<i64: 49, 256>}, {transform_indices = @transform_4, window_bounds = array<i64: 1>}, {transform_indices = @transform_5, window_bounds = array<i64: 2, 256>}, {transform_indices = @transform_6, window_bounds = array<i64: 2, 49, 256>}]} {
    %c0 = arith.constant 0 : index
    %0 = memref.load %arg6[%c0] : memref<1xf32, #tpu.memory_space<smem>>
    %c0_0 = arith.constant 0 : index
    %c0_1 = arith.constant 0 : index
    %1 = vector.load %arg2[%c0_0, %c0_1] : memref<2x256xf32, #tpu.memory_space<vmem>>, vector<2x256xf32>
    %c0_2 = arith.constant 0 : index
    %c0_3 = arith.constant 0 : index
    %2 = vector.load %arg4[%c0_2, %c0_3] : memref<1x256xf32, #tpu.memory_space<vmem>>, vector<1x256xf32>
    %3 = vector.broadcast %2 : vector<1x256xf32> to vector<2x256xf32>
    %4 = arith.addf %1, %3 : vector<2x256xf32>
    %5 = vector.broadcast %0 : f32 to vector<2x256xf32>
    %6 = arith.mulf %4, %5 : vector<2x256xf32>
    %c0_4 = arith.constant 0 : index
    %c0_5 = arith.constant 0 : index
    %7 = vector.load %arg7[%c0_4, %c0_5] : memref<2x256xf32, #tpu.memory_space<vmem>>, vector<2x256xf32>
    tpu.vector_store %arg7[%c0_4, %c0_5], %6 {strides = array<i32>} : memref<2x256xf32, #tpu.memory_space<vmem>>, vector<2x256xf32>,
    %c0_6 = arith.constant 0 : index
    %c0_7 = arith.constant 0 : index
    %c0_8 = arith.constant 0 : index
    %8 = vector.load %arg3[%c0_6, %c0_7, %c0_8] : memref<2x49x256xf32, #tpu.memory_space<vmem>>, vector<2x49x256xf32>
    %c0_9 = arith.constant 0 : index
    %c0_10 = arith.constant 0 : index
    %9 = vector.load %arg5[%c0_9, %c0_10] : memref<49x256xf32, #tpu.memory_space<vmem>>, vector<49x256xf32>
    %10 = vector.shape_cast %9 : vector<49x256xf32> to vector<1x49x256xf32>
    %11 = vector.broadcast %10 : vector<1x49x256xf32> to vector<2x49x256xf32>
    %12 = arith.addf %8, %11 : vector<2x49x256xf32>
    %c0_11 = arith.constant 0 : index
    %c0_12 = arith.constant 0 : index
    %c0_13 = arith.constant 0 : index
    %13 = vector.load %arg8[%c0_11, %c0_12, %c0_13] : memref<2x49x256xf32, #tpu.memory_space<vmem>>, vector<2x49x256xf32>
    tpu.vector_store %arg8[%c0_11, %c0_12, %c0_13], %12 {strides = array<i32>} : memref<2x49x256xf32, #tpu.memory_space<vmem>>, vector<2x49x256xf32>,
    return
  }
  func.func @transform_0(%arg0: i32, %arg1: i32) -> (i32, i32) {
    %c0_i32 = arith.constant 0 : i32
    return %arg1, %arg0 : i32, i32
  }
  func.func @transform_1(%arg0: i32, %arg1: i32) -> (i32, i32, i32) {
    %c0_i32 = arith.constant 0 : i32
    %c0_i32_0 = arith.constant 0 : i32
    return %arg1, %c0_i32, %arg0 : i32, i32, i32
  }
  func.func @transform_2(%arg0: i32, %arg1: i32) -> (i32, i32) {
    %c0_i32 = arith.constant 0 : i32
    %c0_i32_0 = arith.constant 0 : i32
    return %c0_i32, %arg0 : i32, i32
  }
  func.func @transform_3(%arg0: i32, %arg1: i32) -> (i32, i32) {
    %c0_i32 = arith.constant 0 : i32
    %c0_i32_0 = arith.constant 0 : i32
    return %c0_i32, %arg0 : i32, i32
  }
  func.func @transform_4(%arg0: i32, %arg1: i32) -> i32 {
    %c0_i32 = arith.constant 0 : i32
    %c0_i32_0 = arith.constant 0 : i32
    return %c0_i32 : i32
  }
  func.func @transform_5(%arg0: i32, %arg1: i32) -> (i32, i32) {
    %c0_i32 = arith.constant 0 : i32
    return %arg1, %arg0 : i32, i32
  }
  func.func @transform_6(%arg0: i32, %arg1: i32) -> (i32, i32, i32) {
    %c0_i32 = arith.constant 0 : i32
    %c0_i32_0 = arith.constant 0 : i32
    return %arg1, %c0_i32, %arg0 : i32, i32, i32
  }
}

</mosaic_0001>

<bundles_post_ra>
// kernel: tpu_custom_call.1
= control target key start
LH: loop header
LB: loop body
LE: loop exit
PB: predicated region body
PF: predicated region fallthrough
CT: control target
= control target key end

     0   :  { %s1447_s0 = inlined_call_operand.vmem [shape: f32[2,512], index: 0, kind: input, shape index: {}]   ;;  %s1448_s1 = inlined_call_operand.vmem [shape: f32[2,49,512], index: 1, kind: input, shape index: {}]   ;;  %s1449_s2 = inlined_call_operand.vmem [shape: f32[1,512], index: 2, kind: input, shape index: {}]   ;;  %s1450_s3 = inlined_call_operand.vmem [shape: f32[49,512], index: 3, kind: input, shape index: {}]   ;;  %s1451_s4 = inlined_call_operand.<no memory space> [shape: f32[1], index: 4, kind: input, shape index: {}]   ;;  %s1452_s5 = inlined_call_operand.hbm [shape: f32[2,512], index: 5, kind: output, shape index: {0}]   ;;  %s1453_s6 = inlined_call_operand.vmem [shape: f32[2,49,512], index: 6, kind: output, shape index: {1}]  }
   0x1   :  { %12 = sst [smem:[#allocation2]] %s1451_s4 }
   0x2   :  { %13 = vsyncpa [#allocation6], 0 }
   0x3   :  { %15 = vsyncpa [#allocation6 + $0x1], 0  ;;  %s1051_s23 = smov 0   ;;  %s1053_s24 = smov 0  }
   0x4   :  { %s1055_s25 = smov 0   ;;  %s1057_s26 = smov 0  }
   0x5   :  { %s1059_s27 = smov 0   ;;  %s1061_s28 = smov 0  }
   0x6 LB: > { %s850_s4 = sadd.s32 4294967295, %s1011_s28   ;;  %s851_s29 = sadd.s32 4294967294, %s1011_s28   ;;  %s1011_s28 = sphi %s1061_s28, %s21_s28   ;;  %s1007_s27 = sphi %s1059_s27, %s1461_s27   ;;  %s1003_s26 = sphi %s1057_s26, %s1460_s26   ;;  %s999_s25 = sphi %s1055_s25, %s1459_s25   ;;  %s995_s24 = sphi %s1053_s24, %s1458_s24   ;;  %s991_s23 = sphi %s1051_s23, %s1457_s23  }
   0x7   : > { %s33_s30 = sadd.s32 1, %s1007_s27  ;;  %s70_s7 = sadd.s32 1, %s999_s25 }
   0x8   : > { %p35_p0 = scmp.ge.s32.totalorder %s33_s30, 2  ;;  %p77_p1 = scmp.ne.s32.totalorder %s999_s25, %s995_s24 }
   0x9   : > { %p78_p2 = scmp.eq.s32.totalorder %s1011_s28, 0  ;;  %p182_p3 = scmp.eq.s32.totalorder %s850_s4, 1 }
   0xa   : > { %s1463_s30 = smov (%p35_p0, %s33_s30), 0  ;;  %p187_p6 = scmp.ne.s32.totalorder %s995_s24, %s991_s23 }
   0xb   : > { %p1090_p4 = por %p78_p2, %p77_p1  ;;  %p1094_p5 = por %p182_p3, %p77_p1 }
   0xc   : > { %s66_s10 = ssub.s32 %s1007_s27, %s1463_s30  ;;  %p188_p8 = scmp.eq.s32.totalorder %s851_s29, 1 }
   0xd   : > { %p68_p7 = scmp.eq.s32.totalorder %s66_s10, 0  ;;  %p853_p10 = scmp.ge.s32.totalorder %s1011_s28, 2 }
   0xe   : > { %p1105_p9 = por %p188_p8, %p187_p6 }
   0xf   : > { %s1103_s11 = scalar_select %p68_p7, %s999_s25, %s70_s7  }
  0x10   : > { %235 = sbr.rel (%p853_p10) target bundleno = 71 (0x47), region = 20 }
  0x15   : > { %251 = sbr.rel (!%p1090_p4) target bundleno = 53 (0x35), region = 28  ;;  %s253_s13 = sand.u32 (%p1090_p4), 1, %s999_s25  }
  0x16   : > { %s870_s14 = sshll.u32 (%p1090_p4), %s1007_s27, 4  ;;  %s874_s15 = smul.u32 (%p1090_p4), 224, %s253_s13 }
  0x17   : > { %s1119_s18 = scalar_lea.vmem (%p1090_p4), %s1448_s1, %s870_s14 }
  0x18   : > { %v274_v0 = vld [vmem:[%s1119_s18] sm:$0xff] (%p1090_p4)  ;;  %v276_v1 = vld [vmem:[%s1119_s18 + $0x8] sm:$0xff] (%p1090_p4)  ;;  %s1124_s19 = scalar_lea.vmem (%p1090_p4), [#allocation3], %s874_s15 }
  0x19   : > { %v278_v2 = vld [vmem:[%s1119_s18 + $0x20] sm:$0xff] (%p1090_p4)  ;;  %275 = vst [vmem:[%s1124_s19] sm:$0xff] (%p1090_p4), %v274_v0  ;;  %v280_v3 = vld [vmem:[%s1119_s18 + $0x28] sm:$0xff] (%p1090_p4) }
  0x1a   : > { %277 = vst [vmem:[%s1124_s19 + $0x8] sm:$0xff] %v276_v1  ;;  %v282_v4 = vld [vmem:[%s1119_s18 + $0x40] sm:$0xff]  ;;  %v284_v5 = vld [vmem:[%s1119_s18 + $0x48] sm:$0xff] }
  0x1b   : > { %279 = vst [vmem:[%s1124_s19 + $0x10] sm:$0xff] %v278_v2  ;;  %v286_v6 = vld [vmem:[%s1119_s18 + $0x60] sm:$0xff]  ;;  %v288_v7 = vld [vmem:[%s1119_s18 + $0x68] sm:$0xff] }
  0x1c   : > { %281 = vst [vmem:[%s1124_s19 + $0x18] sm:$0xff] %v280_v3  ;;  %v290_v8 = vld [vmem:[%s1119_s18 + $0x80] sm:$0xff]  ;;  %v292_v9 = vld [vmem:[%s1119_s18 + $0x88] sm:$0xff] }
  0x1d   : > { %283 = vst [vmem:[%s1124_s19 + $0x20] sm:$0xff] %v282_v4  ;;  %v294_v10 = vld [vmem:[%s1119_s18 + $0xa0] sm:$0xff]  ;;  %v296_v11 = vld [vmem:[%s1119_s18 + $0xa8] sm:$0xff] }
  0x1e   : > { %285 = vst [vmem:[%s1124_s19 + $0x28] sm:$0xff] %v284_v5  ;;  %v298_v12 = vld [vmem:[%s1119_s18 + $0xc0] sm:$0xff]  ;;  %v300_v13 = vld [vmem:[%s1119_s18 + $0xc8] sm:$0xff] }
  0x1f   : > { %287 = vst [vmem:[%s1124_s19 + $0x30] sm:$0xff] %v286_v6  ;;  %v302_v14 = vld [vmem:[%s1119_s18 + $0xe0] sm:$0xff]  ;;  %v304_v15 = vld [vmem:[%s1119_s18 + $0xe8] sm:$0xff] }
  0x20   : > { %289 = vst [vmem:[%s1124_s19 + $0x38] sm:$0xff] %v288_v7  ;;  %v306_v16 = vld [vmem:[%s1119_s18 + $0x100] sm:$0xff]  ;;  %v308_v17 = vld [vmem:[%s1119_s18 + $0x108] sm:$0xff] }
  0x21   : > { %291 = vst [vmem:[%s1124_s19 + $0x40] sm:$0xff] %v290_v8  ;;  %v310_v18 = vld [vmem:[%s1119_s18 + $0x120] sm:$0xff]  ;;  %v312_v19 = vld [vmem:[%s1119_s18 + $0x128] sm:$0xff] }
  0x22   : > { %293 = vst [vmem:[%s1124_s19 + $0x48] sm:$0xff] %v292_v9  ;;  %v314_v20 = vld [vmem:[%s1119_s18 + $0x140] sm:$0xff]  ;;  %v316_v21 = vld [vmem:[%s1119_s18 + $0x148] sm:$0xff] }
  0x23   : > { %295 = vst [vmem:[%s1124_s19 + $0x50] sm:$0xff] %v294_v10  ;;  %v318_v22 = vld [vmem:[%s1119_s18 + $0x160] sm:$0xff]  ;;  %v320_v23 = vld [vmem:[%s1119_s18 + $0x168] sm:$0xff] }
  0x24   : > { %297 = vst [vmem:[%s1124_s19 + $0x58] sm:$0xff] %v296_v11  ;;  %v322_v24 = vld [vmem:[%s1119_s18 + $0x180] sm:$0xff]  ;;  %v324_v25 = vld [vmem:[%s1119_s18 + $0x188] sm:$0xff] }
  0x25   : > { %299 = vst [vmem:[%s1124_s19 + $0x60] sm:$0xff] %v298_v12  ;;  %v326_v26 = vld [vmem:[%s1119_s18 + $0x1a0] sm:$0xff]  ;;  %v328_v27 = vld [vmem:[%s1119_s18 + $0x1a8] sm:$0xff] }
  0x26   : > { %301 = vst [vmem:[%s1124_s19 + $0x68] sm:$0xff] %v300_v13 }
  0x27   : > { %303 = vst [vmem:[%s1124_s19 + $0x70] sm:$0xff] %v302_v14 }
  0x28   : > { %305 = vst [vmem:[%s1124_s19 + $0x78] sm:$0xff] %v304_v15 }
  0x29   : > { %307 = vst [vmem:[%s1124_s19 + $0x80] sm:$0xff] %v306_v16 }
  0x2a   : > { %309 = vst [vmem:[%s1124_s19 + $0x88] sm:$0xff] %v308_v17 }
  0x2b   : > { %311 = vst [vmem:[%s1124_s19 + $0x90] sm:$0xff] %v310_v18 }
  0x2c   : > { %313 = vst [vmem:[%s1124_s19 + $0x98] sm:$0xff] %v312_v19 }
  0x2d   : > { %315 = vst [vmem:[%s1124_s19 + $0xa0] sm:$0xff] %v314_v20 }
  0x2e   : > { %317 = vst [vmem:[%s1124_s19 + $0xa8] sm:$0xff] %v316_v21 }
  0x2f   : > { %319 = vst [vmem:[%s1124_s19 + $0xb0] sm:$0xff] %v318_v22 }
  0x30   : > { %321 = vst [vmem:[%s1124_s19 + $0xb8] sm:$0xff] %v320_v23 }
  0x31   : > { %323 = vst [vmem:[%s1124_s19 + $0xc0] sm:$0xff] %v322_v24 }
  0x32   : > { %325 = vst [vmem:[%s1124_s19 + $0xc8] sm:$0xff] %v324_v25 }
  0x33   : > { %327 = vst [vmem:[%s1124_s19 + $0xd0] sm:$0xff] %v326_v26 }
  0x34   : > { %329 = vst [vmem:[%s1124_s19 + $0xd8] sm:$0xff] %v328_v27 }
  0x35 PF: > { %343 = sbr.rel (!%p1090_p4) target bundleno = 71 (0x47), region = 55  ;;  %s345_s20 = sand.u32 (%p1090_p4), 1, %s999_s25  }
  0x36   : > { %s871_s21 = sshll.u32 (%p1090_p4), %s1007_s27, 4  ;;  %s875_s22 = smul.u32 (%p1090_p4), 112, %s345_s20 }
  0x37   : > { %s350_s7 = scalar_lea.vmem (%p1090_p4), %s1450_s3, %s871_s21 }
  0x38   : > { %v363_v28 = vld [vmem:[%s350_s7] sm:$0xff] (%p1090_p4)  ;;  %v365_v29 = vld [vmem:[%s350_s7 + $0x8] sm:$0xff] (%p1090_p4)  ;;  %s347_s10 = scalar_lea.vmem (%p1090_p4), [#allocation4], %s875_s22 }
  0x39   : > { %v367_v30 = vld [vmem:[%s350_s7 + $0x20] sm:$0xff] (%p1090_p4)  ;;  %364 = vst [vmem:[%s347_s10] sm:$0xff] (%p1090_p4), %v363_v28  ;;  %v369_v31 = vld [vmem:[%s350_s7 + $0x28] sm:$0xff] (%p1090_p4) }
  0x3a   : > { %366 = vst [vmem:[%s347_s10 + $0x8] sm:$0xff] %v365_v29  ;;  %v371_v32 = vld [vmem:[%s350_s7 + $0x40] sm:$0xff]  ;;  %v373_v33 = vld [vmem:[%s350_s7 + $0x48] sm:$0xff] }
  0x3b   : > { %368 = vst [vmem:[%s347_s10 + $0x10] sm:$0xff] %v367_v30  ;;  %v375_v34 = vld [vmem:[%s350_s7 + $0x60] sm:$0xff]  ;;  %v377_v35 = vld [vmem:[%s350_s7 + $0x68] sm:$0xff] }
  0x3c   : > { %370 = vst [vmem:[%s347_s10 + $0x18] sm:$0xff] %v369_v31  ;;  %v379_v36 = vld [vmem:[%s350_s7 + $0x80] sm:$0xff]  ;;  %v381_v37 = vld [vmem:[%s350_s7 + $0x88] sm:$0xff] }
  0x3d   : > { %372 = vst [vmem:[%s347_s10 + $0x20] sm:$0xff] %v371_v32  ;;  %v383_v38 = vld [vmem:[%s350_s7 + $0xa0] sm:$0xff]  ;;  %v385_v39 = vld [vmem:[%s350_s7 + $0xa8] sm:$0xff] }
  0x3e   : > { %374 = vst [vmem:[%s347_s10 + $0x28] sm:$0xff] %v373_v33  ;;  %v387_v40 = vld [vmem:[%s350_s7 + $0xc0] sm:$0xff]  ;;  %v389_v41 = vld [vmem:[%s350_s7 + $0xc8] sm:$0xff] }
  0x3f   : > { %376 = vst [vmem:[%s347_s10 + $0x30] sm:$0xff] %v375_v34 }
  0x40   : > { %378 = vst [vmem:[%s347_s10 + $0x38] sm:$0xff] %v377_v35 }
  0x41   : > { %380 = vst [vmem:[%s347_s10 + $0x40] sm:$0xff] %v379_v36 }
  0x42   : > { %382 = vst [vmem:[%s347_s10 + $0x48] sm:$0xff] %v381_v37 }
  0x43   : > { %384 = vst [vmem:[%s347_s10 + $0x50] sm:$0xff] %v383_v38 }
  0x44   : > { %386 = vst [vmem:[%s347_s10 + $0x58] sm:$0xff] %v385_v39 }
  0x45   : > { %388 = vst [vmem:[%s347_s10 + $0x60] sm:$0xff] %v387_v40 }
  0x46   : > { %390 = vst [vmem:[%s347_s10 + $0x68] sm:$0xff] %v389_v41 }
  0x47 PF: > { %p858_p11 = scmp.ge.s32.totalorder %s1011_s28, 1  ;;  %p395_p12 = scmp.lt.s32.totalorder %s1011_s28, 3 }
  0x49   : > { %p396_p13 = pnand %p858_p11, %p395_p12 }
  0x4a   : > { %s1189_s8 = sand.u32 (!%p396_p13), 1, %s995_s24   ;;  %s860_s14 = sshll.u32 (!%p396_p13), %s1003_s26, 1 }
  0x4b   : > { %399 = sbr.rel (%p396_p13) target bundleno = 145 (0x91), region = 78  ;;  %p462_p0 = scmp.lt.s32.totalorder (!%p396_p13), %s860_s14, 3 }
  0x4c   : > { %s876_s13 = smul.u32 (!%p396_p13), 224, %s1189_s8  ;;  %s1199_s17 = sld [smem:[#allocation2]] (!%p396_p13) }
  0x4d   : > { %s877_s15 = smul.u32 (!%p396_p13), 112, %s1189_s8  ;;  %s859_s19 = sshll.u32 (!%p396_p13), %s1189_s8, 2 }
  0x4e   : > { %s1194_s16 = scalar_lea.vmem (!%p396_p13), [#allocation3], %s876_s13  ;;  %s1232_s29 = scalar_lea.vmem (!%p396_p13), [#allocation7], %s876_s13 }
  0x4f   : > { %s1201_s18 = scalar_lea.vmem (!%p396_p13), [#allocation4], %s877_s15  ;;  %s872_s13 = sshll.u32 (!%p396_p13), %s1003_s26, 2 }
  0x50   : > { %v494_v42 = vld [vmem:[%s1194_s16] sm:$0xff]  ;;  %v495_v43 = vld [vmem:[%s1194_s16 + $0x8] sm:$0xff]  ;;  %v496_v44 = vld [vmem:[%s1194_s16 + $0x10] sm:$0xff]  ;;  %s1465_s14 = smov (!%p462_p0, %s860_s14), 3  ;;  %vm487_vm0 = vcmask 1041408   ;;  %s1265_s21 = scalar_lea.hbm %s1452_s5, %s872_s13 }
  0x51   : > { %v1204_v45 = vld [vmem:[%s1201_s18] sm:$0xff]  ;;  %v1207_v46 = vld [vmem:[%s1201_s18 + $0x8] sm:$0xff]  ;;  %v1210_v47 = vld [vmem:[%s1201_s18 + $0x10] sm:$0xff]  ;;  %s861_s20 = sshll.u32 %s1465_s14, 1  ;;  %s474_s4 = scalar_lea.vmem %s1449_s2, %s1465_s14 }
  0x52   : > { %v536_v48 = vadd.f32 %v1204_v45, %v494_v42  ;;  %v537_v49 = vadd.f32 %v1207_v46, %v495_v43  ;;  %v538_v50 = vadd.f32 %v1210_v47, %v496_v44  ;;  %v497_v51 = vld [vmem:[%s1194_s16 + $0x18] sm:$0xff]  ;;  %v498_v53 = vld [vmem:[%s1194_s16 + $0x20] sm:$0xff]  ;;  %v499_v56 = vld [vmem:[%s1194_s16 + $0x28] sm:$0xff]  ;;  %s467_s15 = scalar_lea.vmem %s1447_s0, %s861_s20  ;;  %s452_s22 = scalar_lea.vmem [#allocation5], %s859_s19  ;;  %v491_v18 = vstv %s1199_s17 }
  0x53   : > { %v1217_v52 = vld [vmem:[%s1201_s18 + $0x18] sm:$0xff]  ;;  %v1223_v55 = vld [vmem:[%s1201_s18 + $0x20] sm:$0xff]  ;;  %v1227_v57 = vld [vmem:[%s1201_s18 + $0x28] sm:$0xff]  ;;  %s614_s19 = sshll.u32 %s1265_s21, 4  ;;  %s593_s17 = scalar_lea.sflag [#allocation6], %s1189_s8  ;;  %s615_s19 = int_to_ptr.hbm [resolvable:$true] %s614_s19 }
  0x54   : > { %v539_v54 = vadd.f32 %v1217_v52, %v497_v51  ;;  %564 = vst [vmem:[%s1232_s29] sm:$0xff] %v536_v48  ;;  %v540_v58 = vadd.f32 %v1223_v55, %v498_v53  ;;  %v500_v59 = vld [vmem:[%s1194_s16 + $0x30] sm:$0xff]  ;;  %v501_v61 = vld [vmem:[%s1194_s16 + $0x38] sm:$0xff]  ;;  %v482_v62 = vld [vmem:[%s474_s4] sm:$0x3]  ;;  %v541_v63 = vadd.f32 %v1227_v57, %v499_v56  ;;  %s612_s4 = sshll.u32 %s452_s22, 4  ;;  %s953_s13 = scalar_lea.hbm %s1452_s5, 8  ;;  %s1295_s4 = int_to_ptr.vmem [resolvable:$true] %s612_s4 }
  0x55   : > { %v1238_v60 = vld [vmem:[%s1201_s18 + $0x30] sm:$0xff]  ;;  %565 = vst [vmem:[%s1232_s29 + $0x8] sm:$0xff] %v537_v49  ;;  %v1247_v0 = vld [vmem:[%s1201_s18 + $0x38] sm:$0xff]  ;;  %v484_v2 = vperm.slane %v482_v62, 0  ;;  %v485_v3 = vperm.slane %v482_v62, 1  ;;  %v1254_v5 = vld [vmem:[%s1201_s18 + $0x40] sm:$0xff] }
  0x56   : > { %v502_v1 = vld [vmem:[%s1194_s16 + $0x40] sm:$0xff]  ;;  %566 = vst [vmem:[%s1232_s29 + $0x10] sm:$0xff] %v538_v50  ;;  %v542_v4 = vadd.f32 %v1238_v60, %v500_v59  ;;  %v543_v6 = vadd.f32 %v1247_v0, %v501_v61  ;;  %v503_v7 = vld [vmem:[%s1194_s16 + $0x48] sm:$0xff]  ;;  %v504_v12 = vld [vmem:[%s1194_s16 + $0x50] sm:$0xff] }
  0x57   : > { %567 = vst [vmem:[%s1232_s29 + $0x18] sm:$0xff] %v539_v54  ;;  %v1260_v8 = vld [vmem:[%s1201_s18 + $0x48] sm:$0xff]  ;;  %v481_v9 = vld [vmem:[%s467_s15] sm:$0xf]  ;;  %v486_v10 = vrot.slane %v485_v3, 6  ;;  %v544_v11 = vadd.f32 %v1254_v5, %v502_v1  ;;  %v1279_v16 = vld [vmem:[%s1201_s18 + $0x58] sm:$0xff] }
  0x58   : > { %568 = vst [vmem:[%s1232_s29 + $0x20] sm:$0xff] %v540_v58  ;;  %v1271_v13 = vld [vmem:[%s1201_s18 + $0x50] sm:$0xff]  ;;  %v545_v14 = vadd.f32 %v1260_v8, %v503_v7  ;;  %v505_v15 = vld [vmem:[%s1194_s16 + $0x58] sm:$0xff]  ;;  %v1287_v21 = vld [vmem:[%s1201_s18 + $0x60] sm:$0x1] }
  0x59   : > { %569 = vst [vmem:[%s1232_s29 + $0x28] sm:$0xff] %v541_v63  ;;  %v488_v17 = vsel %vm487_vm0, %v484_v2, %v486_v10  ;;  %v546_v19 = vadd.f32 %v1271_v13, %v504_v12  ;;  %v506_v20 = vld [vmem:[%s1194_s16 + $0x60] sm:$0x1]  ;;  %v507_v23 = vld [vmem:[%s1194_s16 + $0x68] sm:$0x1]  ;;  %v547_v25 = vadd.f32 %v1279_v16, %v505_v15  ;;  %v508_v26 = vld [vmem:[%s1194_s16 + $0x70] sm:$0xff] }
  0x5a   : > { %570 = vst [vmem:[%s1232_s29 + $0x30] sm:$0xff] %v542_v4  ;;  %v490_v22 = vadd.f32 %v488_v17, %v481_v9  ;;  %v1293_v24 = vld [vmem:[%s1201_s18 + $0x68] sm:$0x1]  ;;  %v548_v28 = vadd.f32 %v1287_v21, %v506_v20  ;;  %v510_v31 = vld [vmem:[%s1194_s16 + $0x80] sm:$0xff]  ;;  %v550_v32 = vadd.f32 %v1204_v45, %v508_v26  ;;  %v512_v35 = vld [vmem:[%s1194_s16 + $0x90] sm:$0xff]  ;;  %s947_s18 = sshra.s32 %s615_s19, 4  ;;  %s948_s18 = int_to_ptr.hbm [resolvable:$true] %s947_s18 }
  0x5b   : > { %571 = vst [vmem:[%s1232_s29 + $0x38] sm:$0xff] %v543_v6  ;;  %v509_v29 = vld [vmem:[%s1194_s16 + $0x78] sm:$0xff]  ;;  %v549_v30 = vadd.f32 %v1293_v24, %v507_v23  ;;  %v511_v33 = vld [vmem:[%s1194_s16 + $0x88] sm:$0xff]  ;;  %s949_s7 = scalar_lea.hbm %s948_s18, 4  ;;  %p954_p4 = scmp.lt.s32.totalorder %s948_s18, %s1452_s5 }
  0x5c   : > { %572 = vst [vmem:[%s1232_s29 + $0x40] sm:$0xff] %v544_v11  ;;  %v492_v27 = vmul.f32 %v491_v18, %v490_v22  ;;  %v551_v34 = vadd.f32 %v1207_v46, %v509_v29  ;;  %p950_p1 = scmp.ne.s32.totalorder %s948_s18, %s949_s7  ;;  %p955_p6 = scmp.lt.s32.totalorder %s953_s13, %s949_s7 }
  0x5d   : > { %573 = vst [vmem:[%s1232_s29 + $0x48] sm:$0xff] %v545_v14 }
  0x5e   : > { %574 = vst [vmem:[%s1232_s29 + $0x50] sm:$0xff] %v546_v19  ;;  %p951_p2 = pnand %p950_p1, %p1094_p5  ;;  %p956_p7 = por %p955_p6, %p954_p4 }
  0x5f   : > { %493 = vst [vmem:[%s452_s22] sm:$0xf] %v492_v27 }
  0x60   : > { %575 = vst [vmem:[%s1232_s29 + $0x58] sm:$0xff] %v547_v25  ;;  %p952_p3 = pneg %p951_p2 }
  0x62   : > { %p957_p8 = pnand %p956_p7, %p952_p3 }
  0x64   : > { %960 = shalt.err (!%p957_p8)
}
  0x65   : > { %878 = dma.vmem_to_hbm [thread:$0]  (%p1094_p5), %s1295_s4, 64, %s615_s19, %s593_s17   ;;  %576 = vst [vmem:[%s1232_s29 + $0x60] sm:$0x1] %v548_v28  ;;  %v552_v36 = vadd.f32 %v1210_v47, %v510_v31  ;;  %v513_v37 = vld [vmem:[%s1194_s16 + $0x98] sm:$0xff]  ;;  %v553_v38 = vadd.f32 %v1217_v52, %v511_v33  ;;  %v514_v39 = vld [vmem:[%s1194_s16 + $0xa0] sm:$0xff]  ;;  %v554_v40 = vadd.f32 %v1223_v55, %v512_v35  ;;  %v515_v41 = vld [vmem:[%s1194_s16 + $0xa8] sm:$0xff] }
  0x66   : > { %577 = vst [vmem:[%s1232_s29 + $0x68] sm:$0x1] %v549_v30  ;;  %v555_v42 = vadd.f32 %v1227_v57, %v513_v37  ;;  %v516_v43 = vld [vmem:[%s1194_s16 + $0xb0] sm:$0xff]  ;;  %v556_v44 = vadd.f32 %v1238_v60, %v514_v39  ;;  %v517_v45 = vld [vmem:[%s1194_s16 + $0xb8] sm:$0xff]  ;;  %v557_v46 = vadd.f32 %v1247_v0, %v515_v41  ;;  %v518_v47 = vld [vmem:[%s1194_s16 + $0xc0] sm:$0xff]  ;;  %s873_s8 = sshll.u32 (%p1094_p5), %s1003_s26, 4 }
  0x67   : > { %578 = vst [vmem:[%s1232_s29 + $0x70] sm:$0xff] %v550_v32  ;;  %v558_v48 = vadd.f32 %v1254_v5, %v516_v43  ;;  %v519_v49 = vld [vmem:[%s1194_s16 + $0xc8] sm:$0xff]  ;;  %v559_v50 = vadd.f32 %v1260_v8, %v517_v45  ;;  %v520_v51 = vld [vmem:[%s1194_s16 + $0xd0] sm:$0x1]  ;;  %v560_v52 = vadd.f32 %v1271_v13, %v518_v47  ;;  %v521_v53 = vld [vmem:[%s1194_s16 + $0xd8] sm:$0x1]  ;;  %s1368_s22 = scalar_lea.vmem (%p1094_p5), %s1453_s6, %s873_s8 }
  0x68   : > { %579 = vst [vmem:[%s1232_s29 + $0x78] sm:$0xff] %v551_v34  ;;  %v561_v54 = vadd.f32 %v1279_v16, %v519_v49  ;;  %v562_v55 = vadd.f32 %v1287_v21, %v520_v51  ;;  %v563_v56 = vadd.f32 %v1293_v24, %v521_v53  ;;  %v639_v57 = vld [vmem:[%s1232_s29] sm:$0xff] (%p1094_p5)  ;;  %v641_v58 = vld [vmem:[%s1232_s29 + $0x8] sm:$0xff] (%p1094_p5)  ;;  %v643_v59 = vld [vmem:[%s1232_s29 + $0x10] sm:$0xff] (%p1094_p5) }
  0x69   : > { %580 = vst [vmem:[%s1232_s29 + $0x80] sm:$0xff] %v552_v36  ;;  %v645_v60 = vld [vmem:[%s1232_s29 + $0x18] sm:$0xff] (%p1094_p5)  ;;  %v647_v61 = vld [vmem:[%s1232_s29 + $0x20] sm:$0xff] (%p1094_p5)  ;;  %v649_v62 = vld [vmem:[%s1232_s29 + $0x28] sm:$0xff] (%p1094_p5) }
  0x6a   : > { %581 = vst [vmem:[%s1232_s29 + $0x88] sm:$0xff] %v553_v38  ;;  %v651_v63 = vld [vmem:[%s1232_s29 + $0x30] sm:$0xff] (%p1094_p5)  ;;  %v653_v0 = vld [vmem:[%s1232_s29 + $0x38] sm:$0xff] (%p1094_p5)  ;;  %v655_v1 = vld [vmem:[%s1232_s29 + $0x40] sm:$0xff] (%p1094_p5) }
  0x6b   : > { %582 = vst [vmem:[%s1232_s29 + $0x90] sm:$0xff] %v554_v40  ;;  %v657_v2 = vld [vmem:[%s1232_s29 + $0x48] sm:$0xff] (%p1094_p5)  ;;  %v659_v3 = vld [vmem:[%s1232_s29 + $0x50] sm:$0xff] (%p1094_p5)  ;;  %v661_v4 = vld [vmem:[%s1232_s29 + $0x58] sm:$0xff] (%p1094_p5) }
  0x6c   : > { %583 = vst [vmem:[%s1232_s29 + $0x98] sm:$0xff] %v555_v42  ;;  %v663_v5 = vld [vmem:[%s1232_s29 + $0x60] sm:$0xff] (%p1094_p5) }
  0x6d   : > { %584 = vst [vmem:[%s1232_s29 + $0xa0] sm:$0xff] %v556_v44  ;;  %v665_v6 = vld [vmem:[%s1232_s29 + $0x68] sm:$0xff] (%p1094_p5) }
  0x6e   : > { %585 = vst [vmem:[%s1232_s29 + $0xa8] sm:$0xff] %v557_v46  ;;  %v667_v7 = vld [vmem:[%s1232_s29 + $0x70] sm:$0xff] (%p1094_p5) }
  0x6f   : > { %586 = vst [vmem:[%s1232_s29 + $0xb0] sm:$0xff] %v558_v48  ;;  %v669_v8 = vld [vmem:[%s1232_s29 + $0x78] sm:$0xff] (%p1094_p5) }
  0x70   : > { %587 = vst [vmem:[%s1232_s29 + $0xb8] sm:$0xff] %v559_v50  ;;  %620 = sbr.rel (!%p1094_p5) target bundleno = 145 (0x91), region = 94  ;;  %v671_v9 = vld [vmem:[%s1232_s29 + $0x80] sm:$0xff] (%p1094_p5) }
  0x71   : > { %588 = vst [vmem:[%s1232_s29 + $0xc0] sm:$0xff] %v560_v52  ;;  %v673_v10 = vld [vmem:[%s1232_s29 + $0x88] sm:$0xff] (%p1094_p5) }
  0x72   : > { %589 = vst [vmem:[%s1232_s29 + $0xc8] sm:$0xff] %v561_v54  ;;  %v675_v11 = vld [vmem:[%s1232_s29 + $0x90] sm:$0xff] (%p1094_p5) }
  0x73   : > { %590 = vst [vmem:[%s1232_s29 + $0xd0] sm:$0x1] %v562_v55  ;;  %v677_v12 = vld [vmem:[%s1232_s29 + $0x98] sm:$0xff] (%p1094_p5) }
  0x74   : > { %591 = vst [vmem:[%s1232_s29 + $0xd8] sm:$0x1] %v563_v56  ;;  %v679_v13 = vld [vmem:[%s1232_s29 + $0xa0] sm:$0xff] (%p1094_p5) }
  0x75   : > { %640 = vst [vmem:[%s1368_s22] sm:$0xff] %v639_v57  ;;  %v681_v14 = vld [vmem:[%s1232_s29 + $0xa8] sm:$0xff] }
  0x76   : > { %642 = vst [vmem:[%s1368_s22 + $0x8] sm:$0xff] %v641_v58  ;;  %v683_v15 = vld [vmem:[%s1232_s29 + $0xb0] sm:$0xff] }
  0x77   : > { %644 = vst [vmem:[%s1368_s22 + $0x20] sm:$0xff] %v643_v59  ;;  %v685_v16 = vld [vmem:[%s1232_s29 + $0xb8] sm:$0xff] }
  0x78   : > { %646 = vst [vmem:[%s1368_s22 + $0x28] sm:$0xff] %v645_v60  ;;  %v687_v17 = vld [vmem:[%s1232_s29 + $0xc0] sm:$0xff] }
  0x79   : > { %648 = vst [vmem:[%s1368_s22 + $0x40] sm:$0xff] %v647_v61  ;;  %v689_v18 = vld [vmem:[%s1232_s29 + $0xc8] sm:$0xff] }
  0x7a   : > { %650 = vst [vmem:[%s1368_s22 + $0x48] sm:$0xff] %v649_v62  ;;  %v691_v19 = vld [vmem:[%s1232_s29 + $0xd0] sm:$0xff] }
  0x7b   : > { %652 = vst [vmem:[%s1368_s22 + $0x60] sm:$0xff] %v651_v63  ;;  %v693_v20 = vld [vmem:[%s1232_s29 + $0xd8] sm:$0xff] }
  0x7c   : > { %654 = vst [vmem:[%s1368_s22 + $0x68] sm:$0xff] %v653_v0 }
  0x7d   : > { %656 = vst [vmem:[%s1368_s22 + $0x80] sm:$0xff] %v655_v1 }
  0x7e   : > { %658 = vst [vmem:[%s1368_s22 + $0x88] sm:$0xff] %v657_v2 }
  0x7f   : > { %660 = vst [vmem:[%s1368_s22 + $0xa0] sm:$0xff] %v659_v3 }
  0x80   : > { %662 = vst [vmem:[%s1368_s22 + $0xa8] sm:$0xff] %v661_v4 }
  0x81   : > { %664 = vst [vmem:[%s1368_s22 + $0xc0] sm:$0xff] %v663_v5 }
  0x82   : > { %666 = vst [vmem:[%s1368_s22 + $0xc8] sm:$0xff] %v665_v6 }
  0x83   : > { %668 = vst [vmem:[%s1368_s22 + $0xe0] sm:$0xff] %v667_v7 }
  0x84   : > { %670 = vst [vmem:[%s1368_s22 + $0xe8] sm:$0xff] %v669_v8 }
  0x85   : > { %672 = vst [vmem:[%s1368_s22 + $0x100] sm:$0xff] %v671_v9 }
  0x86   : > { %674 = vst [vmem:[%s1368_s22 + $0x108] sm:$0xff] %v673_v10 }
  0x87   : > { %676 = vst [vmem:[%s1368_s22 + $0x120] sm:$0xff] %v675_v11 }
  0x88   : > { %678 = vst [vmem:[%s1368_s22 + $0x128] sm:$0xff] %v677_v12 }
  0x89   : > { %680 = vst [vmem:[%s1368_s22 + $0x140] sm:$0xff] %v679_v13 }
  0x8a   : > { %682 = vst [vmem:[%s1368_s22 + $0x148] sm:$0xff] %v681_v14 }
  0x8b   : > { %684 = vst [vmem:[%s1368_s22 + $0x160] sm:$0xff] %v683_v15 }
  0x8c   : > { %686 = vst [vmem:[%s1368_s22 + $0x168] sm:$0xff] %v685_v16 }
  0x8d   : > { %688 = vst [vmem:[%s1368_s22 + $0x180] sm:$0xff] %v687_v17 }
  0x8e   : > { %690 = vst [vmem:[%s1368_s22 + $0x188] sm:$0xff] %v689_v18 }
  0x8f   : > { %692 = vst [vmem:[%s1368_s22 + $0x1a0] sm:$0xff] %v691_v19 }
  0x90   : > { %694 = vst [vmem:[%s1368_s22 + $0x1a8] sm:$0xff] %v693_v20 }
  0x91 PF: > { %s706_s26 = sand.u32 1, %s991_s23   ;;  %p881_p5 = pnand %p853_p10, %p1105_p9 }
  0x92   : > { %s707_s9 = scalar_lea.sflag [#allocation6], %s706_s26 }
  0x93   : > { %p882_p11 = pneg %p881_p5 }
  0x95   : > { %986 = dma.done.wait (%p882_p11), %s707_s9, 64  }
  0x96   : > { %988 = vsyncadd (%p882_p11), %s707_s9, 4294967232  ;;  %s21_s28 = sadd.s32 1, %s1011_s28   ;;  %s1457_s23 = smov %s995_s24 }
  0x97   : > { %p18_p12 = scmp.ge.s32.totalorder %s21_s28, 4   ;;  %s1458_s24 = smov %s999_s25 }
  0x98   : > { %s1459_s25 = smov %s1103_s11  ;;  %s1460_s26 = smov %s1007_s27 }
  0x99   : > { %s1461_s27 = smov %s1463_s30  ;;  %20 = sbr.rel (!%p18_p12) target bundleno = 6 (0x6), region = 175 }
  0x9e   :  { %720 = vsyncpa [#allocation6], 1 }
  0x9f   :  { %722 = vsyncpa [#allocation6 + $0x1], 1 }

</bundles_post_ra>
